<compile_context>
chip_gen: v7x
topology: tpu7x:2x2x1
jax: 0.10.0
libtpu: 0.0.40
codegen_flags: <defaults>
</compile_context>

<pallas_src>
import jax
import jax.numpy as jnp
from jax.experimental import pallas as pl
from jax.experimental.pallas import tpu as pltpu


LANE = 128            # TPU lane width (last-dim tiling unit)
SUBLANE_F32 = 8       # f32 sublane height
TM_TARGET = 512       # row-tile target (HBM-roofline sweet spot)
TN_TARGET = 512       # col-tile target (multiple of 256 for v6e/v7x MXU)
VMEM_BUDGET = 48 * 1024 * 1024   # conservative: fits v7x (64 MiB physical)


def _round_up(x, m):
    return ((x + m - 1) // m) * m


def _linear_bias_kernel(x_ref, w_ref, b_ref, o_ref):
    # x_ref: (TM, D)  w_ref: (D, TN)  b_ref: (1, TN)  o_ref: (TM, TN)
    acc = jnp.dot(x_ref[...], w_ref[...], preferred_element_type=jnp.float32)
    o_ref[...] = (acc + b_ref[...].astype(jnp.float32)).astype(o_ref.dtype)


def prepare_linear_upsampler_params(weight, bias):
    """One-time parameter prep (do this at init, NOT per forward call).

    weight: (D*s, D) PyTorch nn.Linear layout; bias: (D*s,).
    Returns (w_t, b2d): w_t (D, N_pad), b2d (1, N_pad), N_pad = round_up(D*s, 128).
    """
    n_out, d = weight.shape
    n_pad = _round_up(n_out, LANE)
    w_t = jnp.transpose(weight)                      # (D, N): one-time transpose
    b = bias
    if n_pad != n_out:                               # pad lanes -> unmasked vst
        w_t = jnp.pad(w_t, ((0, 0), (0, n_pad - n_out)))
        b = jnp.pad(b, (0, n_pad - n_out))
    return w_t, b.reshape(1, n_pad)


def _vmem_footprint(tm, tn, d, x_item, w_item, b_item, o_item):
    # double-buffered x / weight / bias / output tiles
    return (2 * tm * d * x_item
            + 2 * d * tn * w_item
            + 2 * SUBLANE_F32 * tn * b_item
            + 2 * tm * tn * o_item)


def linear_upsampler_forward(x, mask, w_t, b2d, s):
    """Pallas implementation of LinearUpsampler.forward.

    Args:
      x:    (B, T, D)  float32 or bfloat16
      mask: (B, T)
      w_t:  (D, N_pad) pre-transposed / lane-padded weight (see prepare_*)
      b2d:  (1, N_pad) lane-padded bias
      s:    upsample factor
    Returns:
      (_x, _mask): _x (B, T*s, D), _mask (B, T*s)
    """
    B, T, D = x.shape
    N = D * s
    n_pad = w_t.shape[1]
    assert w_t.shape[0] == D and b2d.shape == (1, n_pad) and n_pad >= N
    M = B * T

    x2d = x.reshape(M, D)

    # Tile sizes: sublane-aligned rows, lane (128) aligned column tiles.
    itm = x.dtype.itemsize
    itw = w_t.dtype.itemsize
    itb = b2d.dtype.itemsize
    row_align = max(SUBLANE_F32, 32 // itm)
    TM = min(TM_TARGET, _round_up(M, row_align))
    TN = min(TN_TARGET, n_pad)

    # Shrink tiles until the double-buffered footprint fits the VMEM budget.
    while _vmem_footprint(TM, TN, D, itm, itw, itb, itm) > VMEM_BUDGET:
        if TM > row_align:
            TM = max(row_align, TM // 2)
        elif TN > LANE:
            TN = max(LANE, TN // 2)
        else:
            break

    grid = (pl.cdiv(M, TM), pl.cdiv(n_pad, TN))

    footprint = _vmem_footprint(TM, TN, D, itm, itw, itb, itm)
    vmem_limit = int(min(max(2 * footprint, 16 * 1024 * 1024),
                         56 * 1024 * 1024))

    cost = pl.CostEstimate(
        flops=2 * M * D * n_pad,
        transcendentals=0,
        bytes_accessed=M * D * itm + D * n_pad * itw + M * n_pad * itm,
    )

    out2d = pl.pallas_call(
        _linear_bias_kernel,
        out_shape=jax.ShapeDtypeStruct((M, n_pad), x.dtype),
        grid_spec=pltpu.PrefetchScalarGridSpec(
            num_scalar_prefetch=0,
            grid=grid,
            in_specs=[
                pl.BlockSpec((TM, D), lambda i, j: (i, 0)),   # row tile of x
                pl.BlockSpec((D, TN), lambda i, j: (0, j)),   # weight col tile
                pl.BlockSpec((1, TN), lambda i, j: (0, j)),   # bias col tile
            ],
            out_specs=pl.BlockSpec((TM, TN), lambda i, j: (i, j)),
        ),
        compiler_params=pltpu.CompilerParams(
            dimension_semantics=("parallel", "parallel"),
            vmem_limit_bytes=vmem_limit,
        ),
        cost_estimate=cost,
    )(x2d, w_t, b2d)

    if n_pad != N:
        out2d = out2d[:, :N]        # drop zero-padded lanes

    # reshape (B, T, D*s) -> (B, T*s, D)  (pure layout, matches torch .reshape)
    _x = out2d.reshape(B, T * s, D)

    # mask.unsqueeze(-1).expand(B, T, s).reshape(B, -1)
    _mask = jnp.broadcast_to(mask[:, :, None], (B, T, s)).reshape(B, T * s)

    assert _x.shape[1] == _mask.shape[1]
    return _x, _mask


def xavier_normal(key, shape):
    # nn.init.xavier_normal_ for a (fan_out, fan_in) Linear weight
    fan_out, fan_in = shape
    std = (2.0 / (fan_in + fan_out)) ** 0.5
    return std * jax.random.normal(key, shape, dtype=jnp.float32)


if __name__ == "__main__":
    B, T, D, s = 2, 8, 32, 3

    key = jax.random.PRNGKey(0)
    k_x, k_w, k_b, k_m = jax.random.split(key, 4)

    x = jax.random.normal(k_x, (B, T, D), dtype=jnp.float32)
    mask = (jax.random.uniform(k_m, (B, T)) > 0.3).astype(jnp.float32)

    weight = xavier_normal(k_w, (D * s, D))                 # (D*s, D)
    bias = jax.random.normal(k_b, (D * s,), jnp.float32) * 0.01

    # One-time parameter prep (transpose + lane-pad), outside the hot path.
    w_t, b2d = prepare_linear_upsampler_params(weight, bias)

    _x, _mask = linear_upsampler_forward(x, mask, w_t, b2d, s)
    jax.block_until_ready(_x)
    jax.block_until_ready(_mask)

    # reference check in plain JAX
    ref = (x.reshape(B * T, D) @ weight.T + bias).reshape(B, T * s, D)
    ref_mask = jnp.broadcast_to(mask[:, :, None], (B, T, s)).reshape(B, T * s)
    assert _x.shape == (B, T * s, D)
    assert _mask.shape == (B, T * s)
    assert jnp.allclose(_x, ref, atol=1e-5, rtol=1e-5)
    assert jnp.array_equal(_mask, ref_mask)

    print("KERNEL_OK")
</pallas_src>

<mosaic_0001>
module attributes {stable_mosaic.version = 11 : i64} {
  func.func @_linear_bias_kernel(%arg0: i32, %arg1: i32, %arg2: memref<16x32xf32, #tpu.memory_space<vmem>>, %arg3: memref<32x128xf32, #tpu.memory_space<vmem>>, %arg4: memref<1x128xf32, #tpu.memory_space<vmem>>, %arg5: memref<16x128xf32, #tpu.memory_space<vmem>>) attributes {dimension_semantics = [#tpu.dimension_semantics<parallel>, #tpu.dimension_semantics<parallel>], iteration_bounds = array<i64: 1, 1>, scalar_prefetch = 0 : i64, scratch_operands = 0 : i64, tpu.core_type = #tpu.core_type<tc>, window_params = [{transform_indices = @transform_0, window_bounds = array<i64: 16, 32>}, {transform_indices = @transform_1, window_bounds = array<i64: 32, 128>}, {transform_indices = @transform_2, window_bounds = array<i64: 1, 128>}, {transform_indices = @transform_3, window_bounds = array<i64: 16, 128>}]} {
    %c0 = arith.constant 0 : index
    %c0_0 = arith.constant 0 : index
    %0 = vector.load %arg2[%c0, %c0_0] : memref<16x32xf32, #tpu.memory_space<vmem>>, vector<16x32xf32>
    %c0_1 = arith.constant 0 : index
    %c0_2 = arith.constant 0 : index
    %1 = vector.load %arg3[%c0_1, %c0_2] : memref<32x128xf32, #tpu.memory_space<vmem>>, vector<32x128xf32>
    %cst = arith.constant dense<0.000000e+00> : vector<16x128xf32>
    %2 = tpu.matmul %0, %1, %cst {dimension_numbers = #tpu.dot_dimension_numbers<[1], [0], [0], [1], [0, 0, 1, 1], [], []>} : vector<16x32xf32>, vector<32x128xf32>, vector<16x128xf32> -> vector<16x128xf32>
    %c0_3 = arith.constant 0 : index
    %c0_4 = arith.constant 0 : index
    %3 = vector.load %arg4[%c0_3, %c0_4] : memref<1x128xf32, #tpu.memory_space<vmem>>, vector<1x128xf32>
    %4 = vector.broadcast %3 : vector<1x128xf32> to vector<16x128xf32>
    %5 = arith.addf %2, %4 : vector<16x128xf32>
    %c0_5 = arith.constant 0 : index
    %c0_6 = arith.constant 0 : index
    %6 = vector.load %arg5[%c0_5, %c0_6] : memref<16x128xf32, #tpu.memory_space<vmem>>, vector<16x128xf32>
    tpu.vector_store %arg5[%c0_5, %c0_6], %5 {strides = array<i32>} : memref<16x128xf32, #tpu.memory_space<vmem>>, vector<16x128xf32>,
    return
  }
  func.func @transform_0(%arg0: i32, %arg1: i32) -> (i32, i32) {
    %c0_i32 = arith.constant 0 : i32
    %c0_i32_0 = arith.constant 0 : i32
    return %arg0, %c0_i32 : i32, i32
  }
  func.func @transform_1(%arg0: i32, %arg1: i32) -> (i32, i32) {
    %c0_i32 = arith.constant 0 : i32
    %c0_i32_0 = arith.constant 0 : i32
    return %c0_i32, %arg1 : i32, i32
  }
  func.func @transform_2(%arg0: i32, %arg1: i32) -> (i32, i32) {
    %c0_i32 = arith.constant 0 : i32
    %c0_i32_0 = arith.constant 0 : i32
    return %c0_i32, %arg1 : i32, i32
  }
  func.func @transform_3(%arg0: i32, %arg1: i32) -> (i32, i32) {
    %c0_i32 = arith.constant 0 : i32
    return %arg0, %arg1 : i32, i32
  }
}

</mosaic_0001>

<bundles_post_ra>
// kernel: tpu_custom_call.1
= control target key start
LH: loop header
LB: loop body
LE: loop exit
PB: predicated region body
PF: predicated region fallthrough
CT: control target
= control target key end

     0   :  { %8 = vsyncpa [#allocation3], 0  ;;  %s336_s0 = inlined_call_operand.hbm [shape: f32[16,32], index: 0, kind: input, shape index: {}]   ;;  %s337_s1 = inlined_call_operand.hbm [shape: f32[32,128], index: 1, kind: input, shape index: {}]   ;;  %s338_s2 = inlined_call_operand.vmem [shape: f32[1,128], index: 2, kind: input, shape index: {}]   ;;  %s339_s3 = inlined_call_operand.hbm [shape: f32[16,128], index: 3, kind: output, shape index: {}]  }
   0x1   :  { %9 = vsyncpa [#allocation6], 0 }
   0x2   :  { %10 = vsyncpa [#allocation4], 0  ;;  %s263_s12 = smov [#allocation2]   ;;  %s191_s16 = scalar_lea.hbm %s336_s0, 256 }
   0x3   :  { %s16_s13 = sshll.u32 %s263_s12, 4  ;;  %p192_p0 = scmp.ne.s32.totalorder %s336_s0, %s191_s16  ;;  %s17_s13 = int_to_ptr.vmem [resolvable:$true] %s16_s13 }
   0x4   :  { %p195_p1 = scmp.lt.u32.totalorder %s191_s16, %s336_s0 }
   0x6   :  { %p197_p2 = pnand %p195_p1, %p192_p0 }
   0x8   :  { %200 = shalt.err (!%p197_p2)
}
   0x9   :  { %s201_s21 = scalar_lea.vmem %s17_s13, 256  ;;  %p206_p4 = scmp.lt.s32.totalorder %s17_s13, %s17_s13 }
   0xa   :  { %p202_p3 = scmp.ne.s32.totalorder %s17_s13, %s201_s21  ;;  %p207_p5 = scmp.lt.s32.totalorder %s201_s21, %s201_s21 }
   0xc   :  { %p208_p6 = por %p207_p5, %p206_p4 }
   0xe   :  { %p209_p7 = pnand %p208_p6, %p202_p3 }
  0x10   :  { %212 = shalt.err (!%p209_p7)
}
  0x11   :  { %s264_s22 = smov 128   ;;  %s265_s23 = smov 8  }
  0x12   :  { %22 = dma.hbm_to_vmem [thread:$0]  %s336_s0, 256, %s17_s13, [#allocation3], %s264_s22, %s264_s22, %s265_s23  }
  0x13   :  { %s266_s26 = smov [#allocation5]   ;;  %s213_s30 = scalar_lea.hbm %s337_s1, 512 }
  0x14   :  { %s28_s27 = sshll.u32 %s266_s26, 4  ;;  %p214_p8 = scmp.ne.s32.totalorder %s337_s1, %s213_s30  ;;  %s29_s27 = int_to_ptr.vmem [resolvable:$true] %s28_s27 }
  0x15   :  { %p217_p9 = scmp.lt.u32.totalorder %s213_s30, %s337_s1 }
  0x17   :  { %p219_p10 = pnand %p217_p9, %p214_p8 }
  0x19   :  { %222 = shalt.err (!%p219_p10)
}
  0x1a   :  { %s223_s8 = scalar_lea.vmem %s29_s27, 512  ;;  %p228_p12 = scmp.lt.s32.totalorder %s29_s27, %s29_s27 }
  0x1b   :  { %p224_p11 = scmp.ne.s32.totalorder %s29_s27, %s223_s8  ;;  %p229_p13 = scmp.lt.s32.totalorder %s223_s8, %s223_s8 }
  0x1d   :  { %p230_p0 = por %p229_p13, %p228_p12 }
  0x1f   :  { %p231_p1 = pnand %p230_p0, %p224_p11 }
  0x21   :  { %234 = shalt.err (!%p231_p1)
}
  0x22   :  { %34 = dma.hbm_to_vmem [thread:$0]  %s337_s1, 512, %s29_s27, [#allocation6], %s264_s22, %s264_s22, %s265_s23  }
  0x23   :  { %257 = dma.done.wait [#allocation3], 256  }
  0x24   :  { %258 = vsyncadd [#allocation3], 4294967040 }
  0x25   :  { %259 = dma.done.wait [#allocation6], 512  }
  0x26   :  { %260 = vsyncadd [#allocation6], 4294966784  ;;  %vm56_vm0 = vcmask 261120   ;;  %v45_v0 = vld [vmem:[#allocation5] sm:$0xff]  ;;  %v46_v1 = vld [vmem:[#allocation5 + $0x8] sm:$0xff]  ;;  %s267_s11 = smov [#allocation7]  }
  0x27   :  { %v47_v2 = vld [vmem:[#allocation5 + $0x10] sm:$0xff]  ;;  %v178_v3 = vpack.c.bf16 %v46_v1, %v45_v0  ;;  %v48_v4 = vld [vmem:[#allocation5 + $0x18] sm:$0xff]  ;;  %s145_s12 = sshll.u32 %s267_s11, 4  ;;  %s146_s12 = int_to_ptr.vmem [resolvable:$true] %s145_s12 }
  0x28   :  { %v43_v5 = vld [vmem:[#allocation2] sm:$0xff]  ;;  %v182_v6 = vpack.c.bf16 %v48_v4, %v47_v2  ;;  %v44_v7 = vld [vmem:[#allocation2 + $0x8] sm:$0xff]  ;;  %s235_s13 = scalar_lea.vmem %s146_s12, 256  ;;  %p240_p3 = scmp.lt.s32.totalorder %s146_s12, %s146_s12 }
  0x29   :  { %175 = vmatprep.mubr.msk.f32.mxu0 %vm56_vm0, %v43_v5  ;;  %179 = vmatprep.subr.bf16.mxu0 %v178_v3  ;;  %v158_v8 = vld [vmem:[%s338_s2] ss:$0 sm:$0xff]  ;;  %p236_p2 = scmp.ne.s32.totalorder %s146_s12, %s235_s13  ;;  %p241_p4 = scmp.lt.s32.totalorder %s235_s13, %s235_s13 }
  0x2a   :  { %181 = vmatpush3.bf16.msra.mxu0 %v178_v3 }
  0x2b   :  { %183 = vmatprep.subr.bf16.mxu0 %v182_v6  ;;  %p242_p5 = por %p241_p4, %p240_p3 }
  0x2d   :  { %p243_p6 = pnand %p242_p5, %p236_p2 }
  0x2e   :  { %185 = vmatpush3.bf16.msra.mxu0 %v182_v6 }
  0x31   :  { %176 = vmatmul.mubr.msk.f32.vlgmr.msra.gmra.mrb[0].mxu0 %vm56_vm0, %v44_v7 }
 0x104   :  { %v177_v9 = vpop.f32.mrb[0].mxu0 }
 0x105   :  { %v135_v10 = vadd.f32 %v177_v9, %v158_v8  ;;  %v129_v11 = vpop.f32.mrb[1].mxu0 }
 0x106   :  { %v130_v12 = vadd.f32 %v158_v8, %v129_v11 }
 0x107   :  { %139 = vst [vmem:[#allocation7 + $0x8] sm:$0xff] %v135_v10 }
 0x108   :  { %138 = vst [vmem:[#allocation7] sm:$0xff] %v130_v12 }
 0x109   :  { %246 = shalt.err (!%p243_p6)
}
 0x10a   :  { %s247_s2 = scalar_lea.hbm %s339_s3, 256 }
 0x10b   :  { %p248_p7 = scmp.ne.s32.totalorder %s339_s3, %s247_s2  ;;  %p251_p8 = scmp.lt.u32.totalorder %s247_s2, %s339_s3 }
 0x10d   :  { %p253_p9 = pnand %p251_p8, %p248_p7 }
 0x10f   :  { %256 = shalt.err (!%p253_p9)
}
 0x110   :  { %151 = dma.vmem_to_hbm [thread:$0]  %s146_s12, 256, %s339_s3, [#allocation4], %s264_s22, %s264_s22, %s265_s23  }
 0x111   :  { %261 = dma.done.wait [#allocation4], 256  }
 0x112   :  { %262 = vsyncadd [#allocation4], 4294967040 }
 0x113   :  { %155 = vsyncpa [#allocation3], 1 }
 0x114   :  { %156 = vsyncpa [#allocation6], 1 }
 0x115   :  { %157 = vsyncpa [#allocation4], 1 }

</bundles_post_ra>
